<compile_context>
chip_gen: v6e
topology: v6e:2x2x1
jax: 0.10.0
libtpu: 0.0.40
codegen_flags: <defaults>
</compile_context>

<pallas_src>
import math
from collections import OrderedDict

import jax
import jax.numpy as jnp
from jax.experimental import pallas as pl
from jax.experimental.pallas import tpu as pltpu

ACTION_KEY_DIM = OrderedDict({
    'forward': {'type': 'one-hot', 'dim': 2}, 'back': {'type': 'one-hot', 'dim': 2},
    'left': {'type': 'one-hot', 'dim': 2}, 'right': {'type': 'one-hot', 'dim': 2},
    'jump': {'type': 'one-hot', 'dim': 2}, 'sneak': {'type': 'one-hot', 'dim': 2},
    'sprint': {'type': 'one-hot', 'dim': 2}, 'attack': {'type': 'one-hot', 'dim': 2},
    'use': {'type': 'one-hot', 'dim': 2}, 'drop': {'type': 'one-hot', 'dim': 2},
    'inventory': {'type': 'one-hot', 'dim': 2}, 'camera': {'type': 'real', 'dim': 2},
    'hotbar.1': {'type': 'one-hot', 'dim': 2}, 'hotbar.2': {'type': 'one-hot', 'dim': 2},
    'hotbar.3': {'type': 'one-hot', 'dim': 2}, 'hotbar.4': {'type': 'one-hot', 'dim': 2},
    'hotbar.5': {'type': 'one-hot', 'dim': 2}, 'hotbar.6': {'type': 'one-hot', 'dim': 2},
    'hotbar.7': {'type': 'one-hot', 'dim': 2}, 'hotbar.8': {'type': 'one-hot', 'dim': 2},
    'hotbar.9': {'type': 'one-hot', 'dim': 2},
})
ACTION_KEYS = list(ACTION_KEY_DIM.keys())                                   # 21 keys
ONEHOT_KEYS = [k for k in ACTION_KEYS if ACTION_KEY_DIM[k]['type'] == 'one-hot']  # 20 keys
CAMERA_IDX = ACTION_KEYS.index('camera')                                    # position 11
NUM_ONEHOT = len(ONEHOT_KEYS)                                               # 20
NUM_KEYS = len(ACTION_KEYS)                                                 # 21
K_PAD = 128   # lane-padded contraction dim: 20 binary + 2 camera + 106 zero lanes


# ---------------------------------------------------------------------------
# Pallas kernel: one MXU matmul + bias add per (TB, C) output tile.
# ---------------------------------------------------------------------------
def _fused_kernel(x_ref, w_ref, b_ref, o_ref):
    o_ref[...] = (
        jnp.dot(x_ref[...], w_ref[...], preferred_element_type=jnp.float32)
        + b_ref[...]
    ).astype(o_ref.dtype)


# ---------------------------------------------------------------------------
# One-time (inference) weight folding: exact algebraic refactor of the module.
# ---------------------------------------------------------------------------
def fold_params(params, *, intermediate_dim, num_channels):
    D, C = intermediate_dim, num_channels
    emb = params['emb_w'].reshape(NUM_ONEHOT, 2, D)         # [20, 2, D]
    fin = params['fin_w'].reshape(NUM_KEYS, D, C)           # [21, D, C]
    # fin slices of the 20 one-hot keys, in concat order (camera at CAMERA_IDX excluded)
    fin_oh = jnp.concatenate([fin[:CAMERA_IDX], fin[CAMERA_IDX + 1:]], axis=0)  # [20,D,C]

    delta = jnp.einsum('kd,kdc->kc', emb[:, 1] - emb[:, 0], fin_oh)   # [20, C]
    base = jnp.einsum('kd,kdc->c', emb[:, 0], fin_oh)                 # [C]
    cam_fold = params['cam_w'] @ fin[CAMERA_IDX]                      # [2, C]
    b_total = params['fin_b'][0] + params['cam_b'][0] @ fin[CAMERA_IDX] + base  # [C]

    w_fold = jnp.zeros((K_PAD, C), jnp.float32)
    w_fold = w_fold.at[:NUM_ONEHOT].set(delta)
    w_fold = w_fold.at[NUM_ONEHOT:NUM_ONEHOT + 2].set(cam_fold)
    return dict(w_fold=w_fold, b_fold=b_total[None, :])


# ---------------------------------------------------------------------------
# Wrapper
# ---------------------------------------------------------------------------
def pack_action(action):
    """Pack the action dict once into (acts [B,20] f32, camera [B,2] f32).

    Call this once upstream if the same packed actions are reused; the forward
    also accepts the pre-packed tuple directly to avoid per-call stacking.
    NOTE: binary actions are assumed to be in {0,1} (as nn.Embedding(2, D) requires).
    """
    acts = jnp.stack([action[k].astype(jnp.float32) for k in ONEHOT_KEYS], axis=-1)
    camera = action['camera'].astype(jnp.float32)
    return acts, camera


def action_embedding_forward(action, folded_params, *, num_channels, batch_block=256):
    """action: dict (key -> array) or pre-packed (acts [B,20], camera [B,2]) tuple."""
    acts, camera = action if isinstance(action, tuple) else pack_action(action)
    B = acts.shape[0]
    C = num_channels

    # Batch tile: multiple of 8 (sublane), capped at batch_block.
    TB = min(batch_block, max(8, -(-B // 8) * 8))
    B_pad = -(-B // TB) * TB

    # Single lane-dense activation slab [B_pad, 128].
    x = jnp.concatenate(
        [acts, camera, jnp.zeros((B, K_PAD - NUM_ONEHOT - 2), jnp.float32)], axis=-1)
    if B_pad != B:
        x = jnp.pad(x, ((0, B_pad - B), (0, 0)))

    out = pl.pallas_call(
        _fused_kernel,
        out_shape=jax.ShapeDtypeStruct((B_pad, C), jnp.float32),
        grid_spec=pltpu.PrefetchScalarGridSpec(
            num_scalar_prefetch=0,
            grid=(B_pad // TB,),
            in_specs=[
                pl.BlockSpec((TB, K_PAD), lambda i: (i, 0)),   # activations: batch-tiled
                pl.BlockSpec((K_PAD, C), lambda i: (0, 0)),    # folded weight: resident
                pl.BlockSpec((1, C), lambda i: (0, 0)),        # folded bias: resident
            ],
            out_specs=pl.BlockSpec((TB, C), lambda i: (i, 0)),
        ),
        compiler_params=pltpu.CompilerParams(
            dimension_semantics=("parallel",)),   # shards batch across v7x's 2 TCs
    )(x, folded_params['w_fold'], folded_params['b_fold'])
    return out[:B]


# ---------------------------------------------------------------------------
# Parameter init (PyTorch-equivalent layouts) and pure-JAX reference.
# ---------------------------------------------------------------------------
def init_params(key, intermediate_dim, num_channels):
    D, C = intermediate_dim, num_channels
    k1, k2, k3, k4, k5 = jax.random.split(key, 5)
    # nn.Embedding default init: N(0, 1); stored flattened [20*2, D].
    emb_w = jax.random.normal(k1, (NUM_ONEHOT * 2, D), jnp.float32)
    # nn.Linear(2, D): uniform(-1/sqrt(fan_in), ...); stored transposed [2, D].
    b_cam = 1.0 / math.sqrt(2.0)
    cam_w = jax.random.uniform(k2, (2, D), jnp.float32, -b_cam, b_cam)
    cam_b = jax.random.uniform(k3, (1, D), jnp.float32, -b_cam, b_cam)
    # nn.Linear(21*D, C); stored transposed [21*D, C].
    fan_in = NUM_KEYS * D
    b_fin = 1.0 / math.sqrt(fan_in)
    fin_w = jax.random.uniform(k4, (fan_in, C), jnp.float32, -b_fin, b_fin)
    fin_b = jax.random.uniform(k5, (1, C), jnp.float32, -b_fin, b_fin)
    return dict(emb_w=emb_w, cam_w=cam_w, cam_b=cam_b, fin_w=fin_w, fin_b=fin_b)


def reference_forward(action, params, *, intermediate_dim):
    """Pure-JAX reference matching the PyTorch forward (un-folded weights)."""
    D = intermediate_dim
    emb_w = params['emb_w'].reshape(NUM_ONEHOT, 2, D)
    chunks, oh = [], 0
    for key in ACTION_KEYS:
        if key == 'camera':
            chunks.append(action['camera'].astype(jnp.float32) @ params['cam_w']
                          + params['cam_b'][0])
        else:
            idx = action[key].astype(jnp.int32)
            chunks.append(emb_w[oh][idx])
            oh += 1
    feat = jnp.concatenate(chunks, axis=-1)
    return feat @ params['fin_w'] + params['fin_b'][0]


if __name__ == "__main__":
    INTERMEDIATE_DIM = 32
    NUM_CHANNELS = 128

    root = jax.random.PRNGKey(0)
    pkey, akey, ckey, akey2, ckey2 = jax.random.split(root, 5)
    params = init_params(pkey, INTERMEDIATE_DIM, NUM_CHANNELS)
    folded = fold_params(params, intermediate_dim=INTERMEDIATE_DIM,
                         num_channels=NUM_CHANNELS)

    # --- case 1: small batch, single grid step -----------------------------
    B = 8
    akeys = jax.random.split(akey, NUM_ONEHOT)
    action = {k: jax.random.bernoulli(akeys[i], 0.5, (B,)).astype(jnp.int32)
              for i, k in enumerate(ONEHOT_KEYS)}
    action['camera'] = jax.random.normal(ckey, (B, 2), jnp.float32)

    out = action_embedding_forward(action, folded, num_channels=NUM_CHANNELS)
    out = jax.block_until_ready(out)
    ref = reference_forward(action, params, intermediate_dim=INTERMEDIATE_DIM)
    assert out.shape == (B, NUM_CHANNELS)
    assert jnp.allclose(out, ref, atol=1e-4, rtol=1e-4), "mismatch vs JAX reference (B=8)"

    # --- case 2: multi-block grid (batch tiling + padding path) ------------
    B2 = 20
    akeys2 = jax.random.split(akey2, NUM_ONEHOT)
    action2 = {k: jax.random.bernoulli(akeys2[i], 0.5, (B2,)).astype(jnp.int32)
               for i, k in enumerate(ONEHOT_KEYS)}
    action2['camera'] = jax.random.normal(ckey2, (B2, 2), jnp.float32)

    out2 = action_embedding_forward(pack_action(action2), folded,
                                    num_channels=NUM_CHANNELS, batch_block=8)
    out2 = jax.block_until_ready(out2)
    ref2 = reference_forward(action2, params, intermediate_dim=INTERMEDIATE_DIM)
    assert out2.shape == (B2, NUM_CHANNELS)
    assert jnp.allclose(out2, ref2, atol=1e-4, rtol=1e-4), "mismatch vs JAX reference (B=20)"

    print("KERNEL_OK")
</pallas_src>

<mosaic_0001>
module attributes {stable_mosaic.version = 11 : i64} {
  func.func @_fused_kernel(%arg0: i32, %arg1: memref<8x128xf32, #tpu.memory_space<vmem>>, %arg2: memref<128x128xf32, #tpu.memory_space<vmem>>, %arg3: memref<1x128xf32, #tpu.memory_space<vmem>>, %arg4: memref<8x128xf32, #tpu.memory_space<vmem>>) attributes {dimension_semantics = [#tpu.dimension_semantics<parallel>], iteration_bounds = array<i64: 1>, scalar_prefetch = 0 : i64, scratch_operands = 0 : i64, tpu.core_type = #tpu.core_type<tc>, window_params = [{transform_indices = @transform_0, window_bounds = array<i64: 8, 128>}, {pipeline_mode = #tpu.pipeline_mode<synchronous>, transform_indices = @transform_1, window_bounds = array<i64: 128, 128>}, {pipeline_mode = #tpu.pipeline_mode<synchronous>, transform_indices = @transform_2, window_bounds = array<i64: 1, 128>}, {transform_indices = @transform_3, window_bounds = array<i64: 8, 128>}]} {
    %c0 = arith.constant 0 : index
    %c0_0 = arith.constant 0 : index
    %0 = vector.load %arg1[%c0, %c0_0] : memref<8x128xf32, #tpu.memory_space<vmem>>, vector<8x128xf32>
    %c0_1 = arith.constant 0 : index
    %c0_2 = arith.constant 0 : index
    %1 = vector.load %arg2[%c0_1, %c0_2] : memref<128x128xf32, #tpu.memory_space<vmem>>, vector<128x128xf32>
    %cst = arith.constant dense<0.000000e+00> : vector<8x128xf32>
    %2 = tpu.matmul %0, %1, %cst {dimension_numbers = #tpu.dot_dimension_numbers<[1], [0], [0], [1], [0, 0, 1, 1], [], []>} : vector<8x128xf32>, vector<128x128xf32>, vector<8x128xf32> -> vector<8x128xf32>
    %c0_3 = arith.constant 0 : index
    %c0_4 = arith.constant 0 : index
    %3 = vector.load %arg3[%c0_3, %c0_4] : memref<1x128xf32, #tpu.memory_space<vmem>>, vector<1x128xf32>
    %4 = vector.broadcast %3 : vector<1x128xf32> to vector<8x128xf32>
    %5 = arith.addf %2, %4 : vector<8x128xf32>
    %c0_5 = arith.constant 0 : index
    %c0_6 = arith.constant 0 : index
    %6 = vector.load %arg4[%c0_5, %c0_6] : memref<8x128xf32, #tpu.memory_space<vmem>>, vector<8x128xf32>
    tpu.vector_store %arg4[%c0_5, %c0_6], %5 {strides = array<i32>} : memref<8x128xf32, #tpu.memory_space<vmem>>, vector<8x128xf32>,
    return
  }
  func.func @transform_0(%arg0: i32) -> (i32, i32) {
    %c0_i32 = arith.constant 0 : i32
    %c0_i32_0 = arith.constant 0 : i32
    return %arg0, %c0_i32 : i32, i32
  }
  func.func @transform_1(%arg0: i32) -> (i32, i32) {
    %c0_i32 = arith.constant 0 : i32
    %c0_i32_0 = arith.constant 0 : i32
    %c0_i32_1 = arith.constant 0 : i32
    return %c0_i32, %c0_i32_0 : i32, i32
  }
  func.func @transform_2(%arg0: i32) -> (i32, i32) {
    %c0_i32 = arith.constant 0 : i32
    %c0_i32_0 = arith.constant 0 : i32
    %c0_i32_1 = arith.constant 0 : i32
    return %c0_i32, %c0_i32_0 : i32, i32
  }
  func.func @transform_3(%arg0: i32) -> (i32, i32) {
    %c0_i32 = arith.constant 0 : i32
    %c0_i32_0 = arith.constant 0 : i32
    return %arg0, %c0_i32 : i32, i32
  }
}

</mosaic_0001>

<bundles_post_ra>
// kernel: tpu_custom_call.1
= control target key start
LH: loop header
LB: loop body
LE: loop exit
PB: predicated region body
PF: predicated region fallthrough
CT: control target
= control target key end

     0   :  { %8 = vsyncpa [#allocation3], 0  ;;  %s317_s0 = inlined_call_operand.hbm [shape: f32[8,128], index: 0, kind: input, shape index: {}]   ;;  %s318_s1 = inlined_call_operand.hbm [shape: f32[128,128], index: 1, kind: input, shape index: {}]   ;;  %s319_s2 = inlined_call_operand.vmem [shape: f32[1,128], index: 2, kind: input, shape index: {}]   ;;  %s320_s3 = inlined_call_operand.hbm [shape: f32[8,128], index: 3, kind: output, shape index: {}]  }
   0x1   :  { %9 = vsyncpa [#allocation6], 0 }
   0x2   :  { %10 = vsyncpa [#allocation4], 0  ;;  %s278_s12 = smov [#allocation2]   ;;  %s279_s14 = smov [#allocation5]  }
   0x3   :  { %s17_s13 = sshll.u32 %s278_s12, 4  ;;  %s26_s15 = sshll.u32 %s279_s14, 4  ;;  %s18_s13 = int_to_ptr.vmem [resolvable:$true] %s17_s13  ;;  %s27_s15 = int_to_ptr.vmem [resolvable:$true] %s26_s15 }
   0x4   :  { %s220_s16 = scalar_lea.vmem %s18_s13, 128  ;;  %p225_p1 = scmp.lt.s32.totalorder %s18_s13, %s18_s13 }
   0x5   :  { %p221_p0 = scmp.ne.s32.totalorder %s18_s13, %s220_s16  ;;  %p226_p2 = scmp.lt.s32.totalorder %s220_s16, %s220_s16 }
   0x7   :  { %p227_p3 = por %p226_p2, %p225_p1 }
   0x9   :  { %p228_p4 = pnand %p227_p3, %p221_p0 }
   0xb   :  { %231 = shalt.err (!%p228_p4)
}
   0xc   :  { %20 = dma.hbm_to_vmem [thread:$0]  %s317_s0, 128, %s18_s13, [#allocation3]  }
   0xd   :  { %s240_s19 = scalar_lea.vmem %s27_s15, 2048  ;;  %p245_p6 = scmp.lt.s32.totalorder %s27_s15, %s27_s15 }
   0xe   :  { %p241_p5 = scmp.ne.s32.totalorder %s27_s15, %s240_s19  ;;  %p246_p7 = scmp.lt.s32.totalorder %s240_s19, %s240_s19 }
  0x10   :  { %p247_p8 = por %p246_p7, %p245_p6 }
  0x12   :  { %p248_p9 = pnand %p247_p8, %p241_p5 }
  0x14   :  { %251 = shalt.err (!%p248_p9)
}
  0x15   :  { %s280_s20 = smov 128   ;;  %s281_s21 = smov 8  }
  0x16   :  { %32 = dma.hbm_to_vmem [thread:$0]  %s318_s1, 2048, %s27_s15, [#allocation6], %s280_s20, %s280_s20, %s281_s21  }
  0x17   :  { %272 = dma.done.wait [#allocation3], 128  }
  0x18   :  { %273 = vsyncadd [#allocation3], 4294967168 }
  0x19   :  { %274 = dma.done.wait [#allocation6], 2048  }
  0x1a   :  { %275 = vsyncadd [#allocation6], 4294965248  ;;  %v282_v0 = vmov 0.0   ;;  %vm283_vm0 = vmmov 0   ;;  %v57_v1 = vld [vmem:[#allocation5 + $0x78] sm:$0xff]  ;;  %v56_v2 = vld [vmem:[#allocation5 + $0x70] sm:$0xff] }
  0x1b   :  { %170 = vmatprep.subr.mxu0 %v282_v0  ;;  %202 = vmatprep.mubr.msk.f32.mxu0 %vm283_vm0, %v282_v0  ;;  %v55_v3 = vld [vmem:[#allocation5 + $0x68] sm:$0xff]  ;;  %v54_v4 = vld [vmem:[#allocation5 + $0x60] sm:$0xff]  ;;  %v53_v5 = vld [vmem:[#allocation5 + $0x58] sm:$0xff]  ;;  %s284_s24 = smov [#allocation7]  }
  0x1c   :  { %171 = vmatpush3.msra.mxu0 %v57_v1  ;;  %v52_v6 = vld [vmem:[#allocation5 + $0x50] sm:$0xff]  ;;  %v51_v7 = vld [vmem:[#allocation5 + $0x48] sm:$0xff]  ;;  %v50_v8 = vld [vmem:[#allocation5 + $0x40] sm:$0xff]  ;;  %s142_s25 = sshll.u32 %s284_s24, 4  ;;  %s143_s25 = int_to_ptr.vmem [resolvable:$true] %s142_s25 }
  0x1d   :  { %172 = vmatprep.subr.mxu0 %v282_v0  ;;  %v49_v9 = vld [vmem:[#allocation5 + $0x38] sm:$0xff]  ;;  %v48_v10 = vld [vmem:[#allocation5 + $0x30] sm:$0xff]  ;;  %v47_v11 = vld [vmem:[#allocation5 + $0x28] sm:$0xff]  ;;  %s252_s26 = scalar_lea.vmem %s143_s25, 128  ;;  %p257_p11 = scmp.lt.s32.totalorder %s143_s25, %s143_s25 }
  0x1e   :  { %173 = vmatpush3.msra.mxu0 %v56_v2  ;;  %v46_v12 = vld [vmem:[#allocation5 + $0x20] sm:$0xff]  ;;  %v45_v13 = vld [vmem:[#allocation5 + $0x18] sm:$0xff]  ;;  %v44_v14 = vld [vmem:[#allocation5 + $0x10] sm:$0xff]  ;;  %p253_p10 = scmp.ne.s32.totalorder %s143_s25, %s252_s26  ;;  %p258_p12 = scmp.lt.s32.totalorder %s252_s26, %s252_s26 }
  0x1f   :  { %174 = vmatprep.subr.mxu0 %v282_v0  ;;  %v43_v15 = vld [vmem:[#allocation5 + $0x8] sm:$0xff]  ;;  %v42_v16 = vld [vmem:[#allocation5] sm:$0xff]  ;;  %v41_v17 = vld [vmem:[#allocation2] sm:$0xff] }
  0x20   :  { %175 = vmatpush3.msra.mxu0 %v55_v3  ;;  %v152_v18 = vld [vmem:[%s319_s2] ss:$0 sm:$0xff]  ;;  %p259_p13 = por %p258_p12, %p257_p11 }
  0x21   :  { %176 = vmatprep.subr.mxu0 %v282_v0 }
  0x22   :  { %177 = vmatpush3.msra.mxu0 %v54_v4  ;;  %p260_p0 = pnand %p259_p13, %p253_p10 }
  0x23   :  { %178 = vmatprep.subr.mxu0 %v282_v0 }
  0x24   :  { %179 = vmatpush3.msra.mxu0 %v53_v5 }
  0x25   :  { %180 = vmatprep.subr.mxu0 %v282_v0 }
  0x26   :  { %181 = vmatpush3.msra.mxu0 %v52_v6 }
  0x27   :  { %182 = vmatprep.subr.mxu0 %v282_v0 }
  0x28   :  { %183 = vmatpush3.msra.mxu0 %v51_v7 }
  0x29   :  { %184 = vmatprep.subr.mxu0 %v282_v0 }
  0x2a   :  { %185 = vmatpush3.msra.mxu0 %v50_v8 }
  0x2b   :  { %186 = vmatprep.subr.mxu0 %v282_v0 }
  0x2c   :  { %187 = vmatpush3.msra.mxu0 %v49_v9 }
  0x2d   :  { %188 = vmatprep.subr.mxu0 %v282_v0 }
  0x2e   :  { %189 = vmatpush3.msra.mxu0 %v48_v10 }
  0x2f   :  { %190 = vmatprep.subr.mxu0 %v282_v0 }
  0x30   :  { %191 = vmatpush3.msra.mxu0 %v47_v11 }
  0x31   :  { %192 = vmatprep.subr.mxu0 %v282_v0 }
  0x32   :  { %193 = vmatpush3.msra.mxu0 %v46_v12 }
  0x33   :  { %194 = vmatprep.subr.mxu0 %v282_v0 }
  0x34   :  { %195 = vmatpush3.msra.mxu0 %v45_v13 }
  0x35   :  { %196 = vmatprep.subr.mxu0 %v282_v0 }
  0x36   :  { %197 = vmatpush3.msra.mxu0 %v44_v14 }
  0x37   :  { %198 = vmatprep.subr.mxu0 %v282_v0 }
  0x38   :  { %199 = vmatpush3.msra.mxu0 %v43_v15 }
  0x39   :  { %200 = vmatprep.subr.mxu0 %v282_v0 }
  0x3a   :  { %201 = vmatpush3.msra.mxu0 %v42_v16 }
  0x3b   :  { %203 = vmatmul.mubr.f32.vlgmr.msra.gmra.mxu0 %v41_v17 }
  0xfb   :  { %v131_v19 = vpop.f32.mrf.mxu0 }
  0xfc   :  { %v132_v20 = vadd.f32 %v152_v18, %v131_v19 }
  0xfd   :  { %v204_v21 = vpop.f32.mrf.mxu0 }
  0xfe   :  { %135 = vst [vmem:[#allocation7] sm:$0xff] %v132_v20 }
  0xff   :  { %263 = shalt.err (!%p260_p0)
}
 0x100   :  { %145 = dma.vmem_to_hbm [thread:$0]  %s143_s25, 128, %s320_s3, [#allocation4]  }
 0x101   :  { %276 = dma.done.wait [#allocation4], 128  }
 0x102   :  { %277 = vsyncadd [#allocation4], 4294967168 }
 0x103   :  { %149 = vsyncpa [#allocation3], 1 }
 0x104   :  { %150 = vsyncpa [#allocation6], 1 }
 0x105   :  { %151 = vsyncpa [#allocation4], 1 }

</bundles_post_ra>
